<compile_context>
chip_gen: v7x
topology: tpu7x:2x2x1
jax: 0.10.0
libtpu: 0.0.40
codegen_flags: <defaults>
</compile_context>

<pallas_src>
import functools

import jax
import jax.numpy as jnp
from jax.experimental import pallas as pl
from jax.experimental.pallas import tpu as pltpu


# ---------------------------------------------------------------------------
# Generic tiled matmul kernel:  out = act(x @ w + b)
# ---------------------------------------------------------------------------

def _round_up(x, m):
    return ((x + m - 1) // m) * m


def _mm_bias_act_kernel(x_ref, w_ref, b_ref, o_ref, acc_ref, *, act):
    """One (tm, tn) output tile of act(X @ W + b), accumulated over the K axis."""
    k = pl.program_id(3)

    @pl.when(k == 0)
    def _init():
        acc_ref[...] = jnp.zeros_like(acc_ref)

    acc_ref[...] += jnp.dot(x_ref[...], w_ref[...],
                            preferred_element_type=jnp.float32)

    @pl.when(k == pl.num_programs(3) - 1)
    def _epilogue():
        out = acc_ref[...] + b_ref[...]            # bias added once per tile (f32)
        if act == "relu":
            out = jnp.maximum(out, 0.0)
        elif act == "elu":
            # clamp the untaken branch to avoid exp overflow; f32 on the accumulator
            out = jnp.where(out > 0.0, out, jnp.exp(jnp.minimum(out, 0.0)) - 1.0)
        o_ref[...] = out.astype(o_ref.dtype)


def tiled_matmul(x, w, b=None, *, act=None, out_dtype=jnp.float32,
                 tm=256, tn=256, tk=512):
    """act((x @ w) + b) with MXU-friendly tiling.

    x: [B, M, K] or [M, K];  w: [B, K, N] (per-batch) or [K, N] (shared);
    b: [N] / [1, N] / None.  Operands are zero-padded to 128-multiples and cast
    to bf16; accumulation and the bias/activation epilogue are f32.
    """
    x_batched = x.ndim == 3
    if not x_batched:
        x = x[None]
    w_batched = w.ndim == 3
    B, M, K = x.shape
    N = w.shape[-1]

    # pad every matrix dim to a multiple of 128, then to a multiple of its tile
    Mp, Kp, Np = (_round_up(d, 128) for d in (M, K, N))
    tm, tn, tk = min(tm, Mp), min(tn, Np), min(tk, Kp)
    Mp, Np, Kp = _round_up(Mp, tm), _round_up(Np, tn), _round_up(Kp, tk)

    x_p = jnp.pad(x, ((0, 0), (0, Mp - M), (0, Kp - K))).astype(jnp.bfloat16)
    if w_batched:
        w_p = jnp.pad(w, ((0, 0), (0, Kp - K), (0, Np - N))).astype(jnp.bfloat16)
        w_spec = pl.BlockSpec((None, tk, tn), lambda bb, i, j, k: (bb, k, j))
    else:
        w_p = jnp.pad(w, ((0, Kp - K), (0, Np - N))).astype(jnp.bfloat16)
        w_spec = pl.BlockSpec((tk, tn), lambda bb, i, j, k: (k, j))
    if b is None:
        b_p = jnp.zeros((1, Np), jnp.float32)
    else:
        b_p = jnp.pad(jnp.asarray(b, jnp.float32).reshape(1, -1),
                      ((0, 0), (0, Np - N)))

    grid = (B, Mp // tm, Np // tn, Kp // tk)

    out_itemsize = jnp.dtype(out_dtype).itemsize
    cost = pl.CostEstimate(
        flops=2 * B * Mp * Kp * Np,
        transcendentals=(B * Mp * Np if act == "elu" else 0),
        bytes_accessed=(x_p.size * 2 + w_p.size * 2 + b_p.size * 4
                        + B * Mp * Np * out_itemsize),
    )

    out = pl.pallas_call(
        functools.partial(_mm_bias_act_kernel, act=act),
        out_shape=jax.ShapeDtypeStruct((B, Mp, Np), out_dtype),
        grid_spec=pltpu.PrefetchScalarGridSpec(
            num_scalar_prefetch=0,
            grid=grid,
            in_specs=[
                pl.BlockSpec((None, tm, tk), lambda bb, i, j, k: (bb, i, k)),
                w_spec,
                pl.BlockSpec((1, tn), lambda bb, i, j, k: (0, j)),
            ],
            out_specs=pl.BlockSpec((None, tm, tn), lambda bb, i, j, k: (bb, i, j)),
            scratch_shapes=[pltpu.VMEM((tm, tn), jnp.float32)],
        ),
        compiler_params=pltpu.CompilerParams(
            dimension_semantics=("parallel", "parallel", "parallel", "arbitrary"),
            vmem_limit_bytes=48 * 1024 * 1024,
        ),
        cost_estimate=cost,
    )(x_p, w_p, b_p)

    out = out[:, :M, :N]
    return out if x_batched else out[0]


# ---------------------------------------------------------------------------
# Plain-JAX glue: adjacency normalization, augmentors
# ---------------------------------------------------------------------------

def normalized_adj(edge_index, edge_weight, num_nodes):
    """D^{-1/2} (A + I) D^{-1/2} as a dense [N, N] matrix (f32)."""
    if edge_weight is None:
        edge_weight = jnp.ones((edge_index.shape[1],), dtype=jnp.float32)
    a = jnp.zeros((num_nodes, num_nodes), dtype=jnp.float32)
    a = a.at[edge_index[0], edge_index[1]].add(edge_weight)
    a = a + jnp.eye(num_nodes, dtype=jnp.float32)        # self loops
    deg = a.sum(axis=1)
    d_inv_sqrt = jnp.where(deg > 0.0, 1.0 / jnp.sqrt(deg), 0.0)
    return a * d_inv_sqrt[:, None] * d_inv_sqrt[None, :]


def aug_feature_mask(x, edge_index, edge_weight):
    """Deterministic feature-masking augmentor (zeros every 4th feature)."""
    f = x.shape[1]
    mask = (jnp.arange(f) % 4 != 0).astype(x.dtype)
    return x * mask[None, :], edge_index, edge_weight


def aug_edge_drop(x, edge_index, edge_weight):
    """Deterministic edge-dropping augmentor (drops edges with (u+v)%5==0)."""
    e = edge_index.shape[1]
    if edge_weight is None:
        edge_weight = jnp.ones((e,), dtype=jnp.float32)
    keep = ((edge_index[0] + edge_index[1]) % 5 != 0).astype(jnp.float32)
    return x, edge_index, edge_weight * keep


# ---------------------------------------------------------------------------
# Encoder (2-layer dense GCN) + projection head, on top of the tiled kernel
# ---------------------------------------------------------------------------

def gcn_encoder(params, x_views, a_views):
    """Batched 2-layer GCN over all views: x_views [V,N,F], a_views [V,N,N]."""
    a_bf = a_views.astype(jnp.bfloat16)                       # biggest operand -> bf16 once
    # layer 1: relu(A @ (X @ W1 + b1))
    t = tiled_matmul(x_views, params["gcn_w1"], params["gcn_b1"],
                     act=None, out_dtype=jnp.bfloat16)
    h = tiled_matmul(a_bf, t, act="relu", out_dtype=jnp.bfloat16)
    # layer 2: A @ (H @ W2 + b2)
    t = tiled_matmul(h, params["gcn_w2"], params["gcn_b2"],
                     act=None, out_dtype=jnp.bfloat16)
    z = tiled_matmul(a_bf, t, act=None, out_dtype=jnp.float32)
    return z


def encoder_forward(params, x, edge_index, edge_weight=None):
    """Mirrors Encoder.forward: returns (z, z1, z2)."""
    num_nodes = x.shape[0]

    x1, ei1, ew1 = aug_feature_mask(x, edge_index, edge_weight)
    x2, ei2, ew2 = aug_edge_drop(x, edge_index, edge_weight)

    a = normalized_adj(edge_index, edge_weight, num_nodes)
    a1 = normalized_adj(ei1, ew1, num_nodes)
    a2 = normalized_adj(ei2, ew2, num_nodes)

    # batch all three views into one set of pallas_calls (leading grid axis)
    x_views = jnp.stack([x, x1, x2], axis=0)                  # [3, N, F]
    a_views = jnp.stack([a, a1, a2], axis=0)                  # [3, N, N]
    z_views = gcn_encoder(params, x_views, a_views)           # [3, N, H]
    return z_views[0], z_views[1], z_views[2]


def project(params, z):
    """Projection head: ELU(z @ W1 + b1) @ W2 + b2."""
    h = tiled_matmul(z.astype(jnp.bfloat16), params["fc1_w"], params["fc1_b"],
                     act="elu", out_dtype=jnp.bfloat16)
    return tiled_matmul(h, params["fc2_w"], params["fc2_b"],
                        act=None, out_dtype=jnp.float32)


# ---------------------------------------------------------------------------
# Deterministic parameter init (shapes from the module's __init__)
# ---------------------------------------------------------------------------

def init_params(key, in_dim, hidden_dim, proj_dim):
    ks = jax.random.split(key, 6)

    def glorot(k, shape):
        scale = jnp.sqrt(2.0 / (shape[0] + shape[1]))
        return jax.random.normal(k, shape, jnp.float32) * scale

    return {
        # GCN encoder weights (stored [in, out])
        "gcn_w1": glorot(ks[0], (in_dim, hidden_dim)),
        "gcn_b1": jnp.zeros((1, hidden_dim), jnp.float32),
        "gcn_w2": glorot(ks[1], (hidden_dim, hidden_dim)),
        "gcn_b2": jnp.zeros((1, hidden_dim), jnp.float32),
        # projection head (fc1: hidden->proj, fc2: proj->hidden), stored [in, out]
        "fc1_w": glorot(ks[2], (hidden_dim, proj_dim)),
        "fc1_b": 0.01 * jax.random.normal(ks[3], (1, proj_dim), jnp.float32),
        "fc2_w": glorot(ks[4], (proj_dim, hidden_dim)),
        "fc2_b": 0.01 * jax.random.normal(ks[5], (1, hidden_dim), jnp.float32),
    }


# ---------------------------------------------------------------------------
# Demo
# ---------------------------------------------------------------------------

if __name__ == "__main__":
    N, F_IN, HIDDEN, PROJ, E = 16, 8, 32, 16, 40

    key = jax.random.PRNGKey(0)
    k_x, k_src, k_dst, k_params = jax.random.split(key, 4)

    x = jax.random.normal(k_x, (N, F_IN), jnp.float32)
    src = jax.random.randint(k_src, (E,), 0, N)
    dst = jax.random.randint(k_dst, (E,), 0, N)
    edge_index = jnp.stack([src, dst], axis=0)           # [2, E]

    params = init_params(k_params, F_IN, HIDDEN, PROJ)

    fwd = jax.jit(encoder_forward)
    z, z1, z2 = fwd(params, x, edge_index)               # mirrors Encoder.forward
    p = jax.jit(project)(params, z)                      # exercises fc1/ELU/fc2 path

    jax.block_until_ready((z, z1, z2, p))

    assert z.shape == (N, HIDDEN) and z1.shape == (N, HIDDEN) and z2.shape == (N, HIDDEN)
    assert p.shape == (N, HIDDEN)
    assert bool(jnp.all(jnp.isfinite(z))) and bool(jnp.all(jnp.isfinite(p)))
    print("KERNEL_OK")
</pallas_src>

<mosaic_0001>
module attributes {stable_mosaic.version = 11 : i64} {
  func.func @_mm_bias_act_kernel(%arg0: i32, %arg1: i32, %arg2: i32, %arg3: i32, %arg4: memref<1x128x128xbf16, #tpu.memory_space<vmem>>, %arg5: memref<128x128xbf16, #tpu.memory_space<vmem>>, %arg6: memref<1x128xf32, #tpu.memory_space<vmem>>, %arg7: memref<1x128x128xbf16, #tpu.memory_space<vmem>>, %arg8: memref<128x128xf32, #tpu.memory_space<vmem>>) attributes {dimension_semantics = [#tpu.dimension_semantics<parallel>, #tpu.dimension_semantics<parallel>, #tpu.dimension_semantics<parallel>, #tpu.dimension_semantics<arbitrary>], iteration_bounds = array<i64: 3, 1, 1, 1>, scalar_prefetch = 0 : i64, scratch_operands = 1 : i64, tpu.core_type = #tpu.core_type<tc>, window_params = [{transform_indices = @transform_0, window_bounds = array<i64: 1, 128, 128>}, {transform_indices = @transform_1, window_bounds = array<i64: 128, 128>}, {transform_indices = @transform_2, window_bounds = array<i64: 1, 128>}, {transform_indices = @transform_3, window_bounds = array<i64: 1, 128, 128>}]} {
    %c0_i32 = arith.constant 0 : i32
    %0 = arith.cmpi eq, %arg3, %c0_i32 : i32
    %1 = arith.extui %0 : i1 to i32
    %c0_i32_0 = arith.constant 0 : i32
    %2 = arith.cmpi ne, %1, %c0_i32_0 : i32
    scf.if %2 {
      %cst_11 = arith.constant 0.000000e+00 : f32
      %13 = vector.broadcast %cst_11 : f32 to vector<128x128xf32>
      %c0_12 = arith.constant 0 : index
      %c0_13 = arith.constant 0 : index
      %14 = vector.load %arg8[%c0_12, %c0_13] : memref<128x128xf32, #tpu.memory_space<vmem>>, vector<128x128xf32>
      tpu.vector_store %arg8[%c0_12, %c0_13], %13 {strides = array<i32>} : memref<128x128xf32, #tpu.memory_space<vmem>>, vector<128x128xf32>,
    } else {
    }
    %c0 = arith.constant 0 : index
    %c0_1 = arith.constant 0 : index
    %3 = vector.load %arg8[%c0, %c0_1] : memref<128x128xf32, #tpu.memory_space<vmem>>, vector<128x128xf32>
    %c0_2 = arith.constant 0 : index
    %c0_3 = arith.constant 0 : index
    %c0_4 = arith.constant 0 : index
    %4 = vector.load %arg4[%c0_2, %c0_3, %c0_4] : memref<1x128x128xbf16, #tpu.memory_space<vmem>>, vector<1x128x128xbf16>
    %5 = vector.shape_cast %4 : vector<1x128x128xbf16> to vector<128x128xbf16>
    %c0_5 = arith.constant 0 : index
    %c0_6 = arith.constant 0 : index
    %6 = vector.load %arg5[%c0_5, %c0_6] : memref<128x128xbf16, #tpu.memory_space<vmem>>, vector<128x128xbf16>
    %cst = arith.constant dense<0.000000e+00> : vector<128x128xf32>
    %7 = tpu.matmul %5, %6, %cst {dimension_numbers = #tpu.dot_dimension_numbers<[1], [0], [0], [1], [0, 0, 1, 1], [], []>} : vector<128x128xbf16>, vector<128x128xbf16>, vector<128x128xf32> -> vector<128x128xf32>
    %8 = arith.addf %3, %7 : vector<128x128xf32>
    %c0_7 = arith.constant 0 : index
    %c0_8 = arith.constant 0 : index
    %9 = vector.load %arg8[%c0_7, %c0_8] : memref<128x128xf32, #tpu.memory_space<vmem>>, vector<128x128xf32>
    tpu.vector_store %arg8[%c0_7, %c0_8], %8 {strides = array<i32>} : memref<128x128xf32, #tpu.memory_space<vmem>>, vector<128x128xf32>,
    %c0_i32_9 = arith.constant 0 : i32
    %10 = arith.cmpi eq, %arg3, %c0_i32_9 : i32
    %11 = arith.extui %10 : i1 to i32
    %c0_i32_10 = arith.constant 0 : i32
    %12 = arith.cmpi ne, %11, %c0_i32_10 : i32
    scf.if %12 {
      %c0_11 = arith.constant 0 : index
      %c0_12 = arith.constant 0 : index
      %13 = vector.load %arg8[%c0_11, %c0_12] : memref<128x128xf32, #tpu.memory_space<vmem>>, vector<128x128xf32>
      %c0_13 = arith.constant 0 : index
      %c0_14 = arith.constant 0 : index
      %14 = vector.load %arg6[%c0_13, %c0_14] : memref<1x128xf32, #tpu.memory_space<vmem>>, vector<1x128xf32>
      %15 = vector.broadcast %14 : vector<1x128xf32> to vector<128x128xf32>
      %16 = arith.addf %13, %15 : vector<128x128xf32>
      %17 = arith.truncf %16 : vector<128x128xf32> to vector<128x128xbf16>
      %c0_15 = arith.constant 0 : index
      %c0_16 = arith.constant 0 : index
      %c0_17 = arith.constant 0 : index
      %18 = vector.load %arg7[%c0_15, %c0_16, %c0_17] : memref<1x128x128xbf16, #tpu.memory_space<vmem>>, vector<1x128x128xbf16>
      %19 = vector.shape_cast %18 : vector<1x128x128xbf16> to vector<128x128xbf16>
      %20 = vector.shape_cast %17 : vector<128x128xbf16> to vector<1x128x128xbf16>
      tpu.vector_store %arg7[%c0_15, %c0_16, %c0_17], %20 {strides = array<i32>} : memref<1x128x128xbf16, #tpu.memory_space<vmem>>, vector<1x128x128xbf16>,
    } else {
    }
    return
  }
  func.func @transform_0(%arg0: i32, %arg1: i32, %arg2: i32, %arg3: i32) -> (i32, i32, i32) {
    %c0_i32 = arith.constant 0 : i32
    return %arg0, %arg1, %arg3 : i32, i32, i32
  }
  func.func @transform_1(%arg0: i32, %arg1: i32, %arg2: i32, %arg3: i32) -> (i32, i32) {
    %c0_i32 = arith.constant 0 : i32
    return %arg3, %arg2 : i32, i32
  }
  func.func @transform_2(%arg0: i32, %arg1: i32, %arg2: i32, %arg3: i32) -> (i32, i32) {
    %c0_i32 = arith.constant 0 : i32
    %c0_i32_0 = arith.constant 0 : i32
    return %c0_i32, %arg2 : i32, i32
  }
  func.func @transform_3(%arg0: i32, %arg1: i32, %arg2: i32, %arg3: i32) -> (i32, i32, i32) {
    %c0_i32 = arith.constant 0 : i32
    return %arg0, %arg1, %arg2 : i32, i32, i32
  }
}

module attributes {stable_mosaic.version = 11 : i64} {
  func.func @_mm_bias_act_kernel(%arg0: i32, %arg1: i32, %arg2: i32, %arg3: i32, %arg4: memref<1x128x128xbf16, #tpu.memory_space<vmem>>, %arg5: memref<1x128x128xbf16, #tpu.memory_space<vmem>>, %arg6: memref<1x128xf32, #tpu.memory_space<vmem>>, %arg7: memref<1x128x128xbf16, #tpu.memory_space<vmem>>, %arg8: memref<128x128xf32, #tpu.memory_space<vmem>>) attributes {dimension_semantics = [#tpu.dimension_semantics<parallel>, #tpu.dimension_semantics<parallel>, #tpu.dimension_semantics<parallel>, #tpu.dimension_semantics<arbitrary>], iteration_bounds = array<i64: 3, 1, 1, 1>, scalar_prefetch = 0 : i64, scratch_operands = 1 : i64, tpu.core_type = #tpu.core_type<tc>, window_params = [{transform_indices = @transform_0, window_bounds = array<i64: 1, 128, 128>}, {transform_indices = @transform_1, window_bounds = array<i64: 1, 128, 128>}, {transform_indices = @transform_2, window_bounds = array<i64: 1, 128>}, {transform_indices = @transform_3, window_bounds = array<i64: 1, 128, 128>}]} {
    %c0_i32 = arith.constant 0 : i32
    %0 = arith.cmpi eq, %arg3, %c0_i32 : i32
    %1 = arith.extui %0 : i1 to i32
    %c0_i32_0 = arith.constant 0 : i32
    %2 = arith.cmpi ne, %1, %c0_i32_0 : i32
    scf.if %2 {
      %cst_12 = arith.constant 0.000000e+00 : f32
      %14 = vector.broadcast %cst_12 : f32 to vector<128x128xf32>
      %c0_13 = arith.constant 0 : index
      %c0_14 = arith.constant 0 : index
      %15 = vector.load %arg8[%c0_13, %c0_14] : memref<128x128xf32, #tpu.memory_space<vmem>>, vector<128x128xf32>
      tpu.vector_store %arg8[%c0_13, %c0_14], %14 {strides = array<i32>} : memref<128x128xf32, #tpu.memory_space<vmem>>, vector<128x128xf32>,
    } else {
    }
    %c0 = arith.constant 0 : index
    %c0_1 = arith.constant 0 : index
    %3 = vector.load %arg8[%c0, %c0_1] : memref<128x128xf32, #tpu.memory_space<vmem>>, vector<128x128xf32>
    %c0_2 = arith.constant 0 : index
    %c0_3 = arith.constant 0 : index
    %c0_4 = arith.constant 0 : index
    %4 = vector.load %arg4[%c0_2, %c0_3, %c0_4] : memref<1x128x128xbf16, #tpu.memory_space<vmem>>, vector<1x128x128xbf16>
    %5 = vector.shape_cast %4 : vector<1x128x128xbf16> to vector<128x128xbf16>
    %c0_5 = arith.constant 0 : index
    %c0_6 = arith.constant 0 : index
    %c0_7 = arith.constant 0 : index
    %6 = vector.load %arg5[%c0_5, %c0_6, %c0_7] : memref<1x128x128xbf16, #tpu.memory_space<vmem>>, vector<1x128x128xbf16>
    %7 = vector.shape_cast %6 : vector<1x128x128xbf16> to vector<128x128xbf16>
    %cst = arith.constant dense<0.000000e+00> : vector<128x128xf32>
    %8 = tpu.matmul %5, %7, %cst {dimension_numbers = #tpu.dot_dimension_numbers<[1], [0], [0], [1], [0, 0, 1, 1], [], []>} : vector<128x128xbf16>, vector<128x128xbf16>, vector<128x128xf32> -> vector<128x128xf32>
    %9 = arith.addf %3, %8 : vector<128x128xf32>
    %c0_8 = arith.constant 0 : index
    %c0_9 = arith.constant 0 : index
    %10 = vector.load %arg8[%c0_8, %c0_9] : memref<128x128xf32, #tpu.memory_space<vmem>>, vector<128x128xf32>
    tpu.vector_store %arg8[%c0_8, %c0_9], %9 {strides = array<i32>} : memref<128x128xf32, #tpu.memory_space<vmem>>, vector<128x128xf32>,
    %c0_i32_10 = arith.constant 0 : i32
    %11 = arith.cmpi eq, %arg3, %c0_i32_10 : i32
    %12 = arith.extui %11 : i1 to i32
    %c0_i32_11 = arith.constant 0 : i32
    %13 = arith.cmpi ne, %12, %c0_i32_11 : i32
    scf.if %13 {
      %c0_12 = arith.constant 0 : index
      %c0_13 = arith.constant 0 : index
      %14 = vector.load %arg8[%c0_12, %c0_13] : memref<128x128xf32, #tpu.memory_space<vmem>>, vector<128x128xf32>
      %c0_14 = arith.constant 0 : index
      %c0_15 = arith.constant 0 : index
      %15 = vector.load %arg6[%c0_14, %c0_15] : memref<1x128xf32, #tpu.memory_space<vmem>>, vector<1x128xf32>
      %16 = vector.broadcast %15 : vector<1x128xf32> to vector<128x128xf32>
      %17 = arith.addf %14, %16 : vector<128x128xf32>
      %cst_16 = arith.constant 0.000000e+00 : f32
      %18 = vector.broadcast %cst_16 : f32 to vector<128x128xf32>
      %19 = arith.maximumf %17, %18 : vector<128x128xf32>
      %20 = arith.truncf %19 : vector<128x128xf32> to vector<128x128xbf16>
      %c0_17 = arith.constant 0 : index
      %c0_18 = arith.constant 0 : index
      %c0_19 = arith.constant 0 : index
      %21 = vector.load %arg7[%c0_17, %c0_18, %c0_19] : memref<1x128x128xbf16, #tpu.memory_space<vmem>>, vector<1x128x128xbf16>
      %22 = vector.shape_cast %21 : vector<1x128x128xbf16> to vector<128x128xbf16>
      %23 = vector.shape_cast %20 : vector<128x128xbf16> to vector<1x128x128xbf16>
      tpu.vector_store %arg7[%c0_17, %c0_18, %c0_19], %23 {strides = array<i32>} : memref<1x128x128xbf16, #tpu.memory_space<vmem>>, vector<1x128x128xbf16>,
    } else {
    }
    return
  }
  func.func @transform_0(%arg0: i32, %arg1: i32, %arg2: i32, %arg3: i32) -> (i32, i32, i32) {
    %c0_i32 = arith.constant 0 : i32
    return %arg0, %arg1, %arg3 : i32, i32, i32
  }
  func.func @transform_1(%arg0: i32, %arg1: i32, %arg2: i32, %arg3: i32) -> (i32, i32, i32) {
    %c0_i32 = arith.constant 0 : i32
    return %arg0, %arg3, %arg2 : i32, i32, i32
  }
  func.func @transform_2(%arg0: i32, %arg1: i32, %arg2: i32, %arg3: i32) -> (i32, i32) {
    %c0_i32 = arith.constant 0 : i32
    %c0_i32_0 = arith.constant 0 : i32
    return %c0_i32, %arg2 : i32, i32
  }
  func.func @transform_3(%arg0: i32, %arg1: i32, %arg2: i32, %arg3: i32) -> (i32, i32, i32) {
    %c0_i32 = arith.constant 0 : i32
    return %arg0, %arg1, %arg2 : i32, i32, i32
  }
}

module attributes {stable_mosaic.version = 11 : i64} {
  func.func @_mm_bias_act_kernel(%arg0: i32, %arg1: i32, %arg2: i32, %arg3: i32, %arg4: memref<1x128x128xbf16, #tpu.memory_space<vmem>>, %arg5: memref<1x128x128xbf16, #tpu.memory_space<vmem>>, %arg6: memref<1x128xf32, #tpu.memory_space<vmem>>, %arg7: memref<1x128x128xf32, #tpu.memory_space<vmem>>, %arg8: memref<128x128xf32, #tpu.memory_space<vmem>>) attributes {dimension_semantics = [#tpu.dimension_semantics<parallel>, #tpu.dimension_semantics<parallel>, #tpu.dimension_semantics<parallel>, #tpu.dimension_semantics<arbitrary>], iteration_bounds = array<i64: 3, 1, 1, 1>, scalar_prefetch = 0 : i64, scratch_operands = 1 : i64, tpu.core_type = #tpu.core_type<tc>, window_params = [{transform_indices = @transform_0, window_bounds = array<i64: 1, 128, 128>}, {transform_indices = @transform_1, window_bounds = array<i64: 1, 128, 128>}, {transform_indices = @transform_2, window_bounds = array<i64: 1, 128>}, {transform_indices = @transform_3, window_bounds = array<i64: 1, 128, 128>}]} {
    %c0_i32 = arith.constant 0 : i32
    %0 = arith.cmpi eq, %arg3, %c0_i32 : i32
    %1 = arith.extui %0 : i1 to i32
    %c0_i32_0 = arith.constant 0 : i32
    %2 = arith.cmpi ne, %1, %c0_i32_0 : i32
    scf.if %2 {
      %cst_12 = arith.constant 0.000000e+00 : f32
      %14 = vector.broadcast %cst_12 : f32 to vector<128x128xf32>
      %c0_13 = arith.constant 0 : index
      %c0_14 = arith.constant 0 : index
      %15 = vector.load %arg8[%c0_13, %c0_14] : memref<128x128xf32, #tpu.memory_space<vmem>>, vector<128x128xf32>
      tpu.vector_store %arg8[%c0_13, %c0_14], %14 {strides = array<i32>} : memref<128x128xf32, #tpu.memory_space<vmem>>, vector<128x128xf32>,
    } else {
    }
    %c0 = arith.constant 0 : index
    %c0_1 = arith.constant 0 : index
    %3 = vector.load %arg8[%c0, %c0_1] : memref<128x128xf32, #tpu.memory_space<vmem>>, vector<128x128xf32>
    %c0_2 = arith.constant 0 : index
    %c0_3 = arith.constant 0 : index
    %c0_4 = arith.constant 0 : index
    %4 = vector.load %arg4[%c0_2, %c0_3, %c0_4] : memref<1x128x128xbf16, #tpu.memory_space<vmem>>, vector<1x128x128xbf16>
    %5 = vector.shape_cast %4 : vector<1x128x128xbf16> to vector<128x128xbf16>
    %c0_5 = arith.constant 0 : index
    %c0_6 = arith.constant 0 : index
    %c0_7 = arith.constant 0 : index
    %6 = vector.load %arg5[%c0_5, %c0_6, %c0_7] : memref<1x128x128xbf16, #tpu.memory_space<vmem>>, vector<1x128x128xbf16>
    %7 = vector.shape_cast %6 : vector<1x128x128xbf16> to vector<128x128xbf16>
    %cst = arith.constant dense<0.000000e+00> : vector<128x128xf32>
    %8 = tpu.matmul %5, %7, %cst {dimension_numbers = #tpu.dot_dimension_numbers<[1], [0], [0], [1], [0, 0, 1, 1], [], []>} : vector<128x128xbf16>, vector<128x128xbf16>, vector<128x128xf32> -> vector<128x128xf32>
    %9 = arith.addf %3, %8 : vector<128x128xf32>
    %c0_8 = arith.constant 0 : index
    %c0_9 = arith.constant 0 : index
    %10 = vector.load %arg8[%c0_8, %c0_9] : memref<128x128xf32, #tpu.memory_space<vmem>>, vector<128x128xf32>
    tpu.vector_store %arg8[%c0_8, %c0_9], %9 {strides = array<i32>} : memref<128x128xf32, #tpu.memory_space<vmem>>, vector<128x128xf32>,
    %c0_i32_10 = arith.constant 0 : i32
    %11 = arith.cmpi eq, %arg3, %c0_i32_10 : i32
    %12 = arith.extui %11 : i1 to i32
    %c0_i32_11 = arith.constant 0 : i32
    %13 = arith.cmpi ne, %12, %c0_i32_11 : i32
    scf.if %13 {
      %c0_12 = arith.constant 0 : index
      %c0_13 = arith.constant 0 : index
      %14 = vector.load %arg8[%c0_12, %c0_13] : memref<128x128xf32, #tpu.memory_space<vmem>>, vector<128x128xf32>
      %c0_14 = arith.constant 0 : index
      %c0_15 = arith.constant 0 : index
      %15 = vector.load %arg6[%c0_14, %c0_15] : memref<1x128xf32, #tpu.memory_space<vmem>>, vector<1x128xf32>
      %16 = vector.broadcast %15 : vector<1x128xf32> to vector<128x128xf32>
      %17 = arith.addf %14, %16 : vector<128x128xf32>
      %c0_16 = arith.constant 0 : index
      %c0_17 = arith.constant 0 : index
      %c0_18 = arith.constant 0 : index
      %18 = vector.load %arg7[%c0_16, %c0_17, %c0_18] : memref<1x128x128xf32, #tpu.memory_space<vmem>>, vector<1x128x128xf32>
      %19 = vector.shape_cast %18 : vector<1x128x128xf32> to vector<128x128xf32>
      %20 = vector.shape_cast %17 : vector<128x128xf32> to vector<1x128x128xf32>
      tpu.vector_store %arg7[%c0_16, %c0_17, %c0_18], %20 {strides = array<i32>} : memref<1x128x128xf32, #tpu.memory_space<vmem>>, vector<1x128x128xf32>,
    } else {
    }
    return
  }
  func.func @transform_0(%arg0: i32, %arg1: i32, %arg2: i32, %arg3: i32) -> (i32, i32, i32) {
    %c0_i32 = arith.constant 0 : i32
    return %arg0, %arg1, %arg3 : i32, i32, i32
  }
  func.func @transform_1(%arg0: i32, %arg1: i32, %arg2: i32, %arg3: i32) -> (i32, i32, i32) {
    %c0_i32 = arith.constant 0 : i32
    return %arg0, %arg3, %arg2 : i32, i32, i32
  }
  func.func @transform_2(%arg0: i32, %arg1: i32, %arg2: i32, %arg3: i32) -> (i32, i32) {
    %c0_i32 = arith.constant 0 : i32
    %c0_i32_0 = arith.constant 0 : i32
    return %c0_i32, %arg2 : i32, i32
  }
  func.func @transform_3(%arg0: i32, %arg1: i32, %arg2: i32, %arg3: i32) -> (i32, i32, i32) {
    %c0_i32 = arith.constant 0 : i32
    return %arg0, %arg1, %arg2 : i32, i32, i32
  }
}

</mosaic_0001>

<bundles_post_ra>
// kernel: encoder_forward.4
= control target key start
LH: loop header
LB: loop body
LE: loop exit
PB: predicated region body
PF: predicated region fallthrough
CT: control target
= control target key end

     0   :  { %s1101_s12 = smov 0   ;;  %s1103_s13 = smov 0   ;;  %s1188_s0 = inlined_call_operand.vmem [shape: bf16[3,128,128], index: 0, kind: input, shape index: {}]   ;;  %s1189_s1 = inlined_call_operand.vmem [shape: bf16[128,128], index: 1, kind: input, shape index: {}]   ;;  %s1190_s2 = inlined_call_operand.vmem [shape: f32[1,128], index: 2, kind: input, shape index: {}]   ;;  %s1191_s3 = inlined_call_operand.vmem [shape: bf16[3,128,128], index: 3, kind: output, shape index: {}]  }
   0x1   :  { %s1105_s14 = smov 0  }
   0x2 LB: > { %s39_s15 = sadd.s32 1, %s1075_s13  ;;  %p848_p0 = scmp.ge.s32.totalorder %s1079_s14, 1  ;;  %s1079_s14 = sphi %s1105_s14, %s13_s14   ;;  %s1075_s13 = sphi %s1103_s13, %s1193_s13   ;;  %s1071_s12 = sphi %s1101_s12, %s1192_s12  }
   0x3   : > { %p41_p1 = scmp.ge.s32.totalorder %s39_s15, 3  ;;  %p203_p2 = scmp.lt.s32.totalorder %s1079_s14, 4 }
   0x5   : > { %s1195_s15 = smov (%p41_p1, %s39_s15), 0  ;;  %p204_p3 = pnand %p848_p0, %p203_p2 }
   0x6   : > { %v1041_v0 = vld [vmem:[%s1189_s1] sm:$0xff] (!%p204_p3)   ;;  %p253_p4 = scmp.lt.s32.totalorder (!%p204_p3), %s1071_s12, 2  ;;  %v1042_v1 = vld [vmem:[%s1189_s1 + $0x8] sm:$0xff] (!%p204_p3)   ;;  %v1043_v2 = vld [vmem:[%s1189_s1 + $0x10] sm:$0xff] (!%p204_p3)  }
   0x7   : > { %207 = sbr.rel (%p204_p3) target bundleno = 267 (0x10b), region = 32  ;;  %969 = vmatprep.subr.bf16.mxu0 (!%p204_p3), %v1041_v0  ;;  %1001 = vmatprep.subr.bf16.mxu1 (!%p204_p3), %v1041_v0  ;;  %v1044_v3 = vld [vmem:[%s1189_s1 + $0x18] sm:$0xff] (!%p204_p3)   ;;  %v1045_v6 = vld [vmem:[%s1189_s1 + $0x20] sm:$0xff] (!%p204_p3)   ;;  %v1046_v7 = vld [vmem:[%s1189_s1 + $0x28] sm:$0xff] (!%p204_p3)  }
   0x8   : > { %970 = vmatpush3.bf16.msra.mxu0 (!%p204_p3), %v1041_v0  ;;  %1009 = vmatpush3.bf16.msra.mxu1 (!%p204_p3), %v1041_v0  ;;  %v1047_v8 = vld [vmem:[%s1189_s1 + $0x30] sm:$0xff] (!%p204_p3)   ;;  %v1048_v9 = vld [vmem:[%s1189_s1 + $0x38] sm:$0xff] (!%p204_p3)   ;;  %v869_v17 = vld [vmem:[%s1190_s2] ss:$0 sm:$0xff] (!%p204_p3) }
   0x9   : > { %971 = vmatprep.subr.bf16.mxu0 (!%p204_p3), %v1042_v1  ;;  %1002 = vmatprep.subr.bf16.mxu1 (!%p204_p3), %v1042_v1 }
   0xc   : > { %972 = vmatpush3.bf16.msra.mxu0 (!%p204_p3), %v1042_v1  ;;  %1010 = vmatpush3.bf16.msra.mxu1 (!%p204_p3), %v1042_v1 }
   0xd   : > { %973 = vmatprep.subr.bf16.mxu0 (!%p204_p3), %v1043_v2  ;;  %1003 = vmatprep.subr.bf16.mxu1 (!%p204_p3), %v1043_v2 }
   0xe   : > { %s1197_s12 = smov (!%p253_p4, %s1071_s12), 2 }
   0xf   : > { %s888_s22 = sshll.u32 %s1197_s12, 6 }
  0x10   : > { %s1136_s25 = scalar_lea.vmem %s1188_s0, %s888_s22  ;;  %974 = vmatpush3.bf16.msra.mxu0 %v1043_v2  ;;  %1011 = vmatpush3.bf16.msra.mxu1 %v1043_v2  ;;  %s1169_s17 = scalar_lea.vmem %s1191_s3, %s888_s22 }
  0x11   : > { %v1049_v4 = vld [vmem:[%s1136_s25] sm:$0xff]   ;;  %975 = vmatprep.subr.bf16.mxu0 %v1044_v3  ;;  %1004 = vmatprep.subr.bf16.mxu1 %v1044_v3  ;;  %v1051_v10 = vld [vmem:[%s1136_s25 + $0x8] sm:$0xff]   ;;  %v1053_v12 = vld [vmem:[%s1136_s25 + $0x10] sm:$0xff]  }
  0x12   : > { %v1050_v5 = vld [vmem:[%s1136_s25 + $0x20] sm:$0xff]   ;;  %985 = vmatprep.mubr.bf16.mxu0 %v1049_v4  ;;  %v1052_v11 = vld [vmem:[%s1136_s25 + $0x28] sm:$0xff]   ;;  %v1054_v13 = vld [vmem:[%s1136_s25 + $0x30] sm:$0xff]  }
  0x13   : > { %993 = vmatprep.mubr.bf16.mxu1 %v1050_v5  ;;  %v1055_v14 = vld [vmem:[%s1136_s25 + $0x18] sm:$0xff]  }
  0x14   : > { %976 = vmatpush3.bf16.msra.mxu0 %v1044_v3  ;;  %1012 = vmatpush3.bf16.msra.mxu1 %v1044_v3  ;;  %v1056_v15 = vld [vmem:[%s1136_s25 + $0x38] sm:$0xff]  }
  0x15   : > { %977 = vmatprep.subr.bf16.mxu0 %v1045_v6  ;;  %1005 = vmatprep.subr.bf16.mxu1 %v1045_v6 }
  0x18   : > { %978 = vmatpush3.bf16.msra.mxu0 %v1045_v6  ;;  %1013 = vmatpush3.bf16.msra.mxu1 %v1045_v6 }
  0x19   : > { %979 = vmatprep.subr.bf16.mxu0 %v1046_v7  ;;  %1006 = vmatprep.subr.bf16.mxu1 %v1046_v7 }
  0x1c   : > { %980 = vmatpush3.bf16.msra.mxu0 %v1046_v7  ;;  %1014 = vmatpush3.bf16.msra.mxu1 %v1046_v7 }
  0x1d   : > { %981 = vmatprep.subr.bf16.mxu0 %v1047_v8  ;;  %1007 = vmatprep.subr.bf16.mxu1 %v1047_v8 }
  0x20   : > { %982 = vmatpush3.bf16.msra.mxu0 %v1047_v8  ;;  %1015 = vmatpush3.bf16.msra.mxu1 %v1047_v8 }
  0x21   : > { %983 = vmatprep.subr.bf16.mxu0 %v1048_v9  ;;  %1008 = vmatprep.subr.bf16.mxu1 %v1048_v9 }
  0x24   : > { %984 = vmatpush3.bf16.msra.mxu0 %v1048_v9  ;;  %1016 = vmatpush3.bf16.msra.mxu1 %v1048_v9 }
  0x27   : > { %986 = vmatmul.mubr.bf16.vlgmr.msra.gmra.mrb[0].mxu0 %v1051_v10  ;;  %994 = vmatmul.mubr.bf16.vlgmr.msra.gmra.mrb[0].mxu1 %v1052_v11 }
  0x28   : > { %989 = vmatprep.mubr.bf16.mxu0 %v1053_v12  ;;  %997 = vmatprep.mubr.bf16.mxu1 %v1054_v13 }
  0x2f   : > { %990 = vmatmul.mubr.bf16.gmra.mrb[4].mxu0 %v1055_v14  ;;  %998 = vmatmul.mubr.bf16.gmra.mrb[4].mxu1 %v1056_v15 }
  0xfa   : > { %v987_v16 = vpop.f32.mrb[0].mxu0  ;;  %v995_v18 = vpop.f32.mrb[0].mxu1 }
  0xfb   : > { %v489_v19 = vpop.f32.mrb[1].mxu0  ;;  %v521_v20 = vpop.f32.mrb[1].mxu1  ;;  %v612_v23 = vadd.f32 %v987_v16, %v869_v17  ;;  %v620_v24 = vadd.f32 %v995_v18, %v869_v17 }
  0xfc   : > { %v988_v21 = vpop.f32.mrb[2].mxu0  ;;  %v996_v22 = vpop.f32.mrb[2].mxu1  ;;  %v610_v29 = vadd.f32 %v869_v17, %v489_v19  ;;  %v618_v30 = vadd.f32 %v869_v17, %v521_v20 }
  0xfd   : > { %v613_v25 = vadd.f32 %v988_v21, %v869_v17  ;;  %v621_v26 = vadd.f32 %v996_v22, %v869_v17  ;;  %v492_v27 = vpop.f32.mrb[3].mxu0  ;;  %v524_v28 = vpop.f32.mrb[3].mxu1 }
  0xfe   : > { %v611_v31 = vadd.f32 %v869_v17, %v492_v27  ;;  %v619_v32 = vadd.f32 %v869_v17, %v524_v28 }
  0xff   : > { %v914_v33 = vpack.c.bf16 %v613_v25, %v612_v23  ;;  %v934_v34 = vpack.c.bf16 %v621_v26, %v620_v24 }
 0x100   : > { %v909_v35 = vpack.c.bf16 %v611_v31, %v610_v29  ;;  %v929_v36 = vpack.c.bf16 %v619_v32, %v618_v30 }
 0x101   : > { %946 = vst [vmem:[%s1169_s17 + $0x8] sm:$0xff] %v914_v33   ;;  %950 = vst [vmem:[%s1169_s17 + $0x28] sm:$0xff] %v934_v34  }
 0x102   : > { %910 = vst [vmem:[%s1169_s17] sm:$0xff] %v909_v35   ;;  %949 = vst [vmem:[%s1169_s17 + $0x20] sm:$0xff] %v929_v36   ;;  %v991_v37 = vpop.f32.mrb[4].mxu0  ;;  %v999_v38 = vpop.f32.mrb[4].mxu1 }
 0x103   : > { %v505_v39 = vpop.f32.mrb[5].mxu0  ;;  %v537_v40 = vpop.f32.mrb[5].mxu1  ;;  %v616_v43 = vadd.f32 %v991_v37, %v869_v17  ;;  %v624_v44 = vadd.f32 %v999_v38, %v869_v17 }
 0x104   : > { %v992_v41 = vpop.f32.mrb[6].mxu0  ;;  %v1000_v42 = vpop.f32.mrb[6].mxu1  ;;  %v614_v49 = vadd.f32 %v869_v17, %v505_v39  ;;  %v622_v50 = vadd.f32 %v869_v17, %v537_v40 }
 0x105   : > { %v617_v45 = vadd.f32 %v992_v41, %v869_v17  ;;  %v625_v46 = vadd.f32 %v1000_v42, %v869_v17  ;;  %v508_v47 = vpop.f32.mrb[7].mxu0  ;;  %v540_v48 = vpop.f32.mrb[7].mxu1 }
 0x106   : > { %v615_v51 = vadd.f32 %v869_v17, %v508_v47  ;;  %v623_v52 = vadd.f32 %v869_v17, %v540_v48 }
 0x107   : > { %v924_v53 = vpack.c.bf16 %v617_v45, %v616_v43  ;;  %v944_v54 = vpack.c.bf16 %v625_v46, %v624_v44 }
 0x108   : > { %v919_v55 = vpack.c.bf16 %v615_v51, %v614_v49  ;;  %v939_v56 = vpack.c.bf16 %v623_v52, %v622_v50 }
 0x109   : > { %948 = vst [vmem:[%s1169_s17 + $0x18] sm:$0xff] %v924_v53   ;;  %952 = vst [vmem:[%s1169_s17 + $0x38] sm:$0xff] %v944_v54  }
 0x10a   : > { %947 = vst [vmem:[%s1169_s17 + $0x10] sm:$0xff] %v919_v55   ;;  %951 = vst [vmem:[%s1169_s17 + $0x30] sm:$0xff] %v939_v56  }
 0x10b PF: > { %s13_s14 = sadd.s32 1, %s1079_s14   ;;  %s1192_s12 = smov %s1075_s13 }
 0x10c   : > { %p10_p5 = scmp.ge.s32.totalorder %s13_s14, 5   ;;  %s1193_s13 = smov %s1195_s15 }
 0x10e   :  { %12 = sbr.rel (!%p10_p5) target bundleno = 2 (0x2), region = 76 }

// kernel: encoder_forward.5
= control target key start
LH: loop header
LB: loop body
LE: loop exit
PB: predicated region body
PF: predicated region fallthrough
CT: control target
= control target key end

     0   :  { %s1136_s12 = smov 0   ;;  %s1138_s13 = smov 0   ;;  %s1210_s0 = inlined_call_operand.vmem [shape: bf16[3,128,128], index: 0, kind: input, shape index: {}]   ;;  %s1211_s1 = inlined_call_operand.vmem [shape: bf16[3,128,128], index: 1, kind: input, shape index: {}]   ;;  %s1212_s2 = inlined_call_operand.vmem [shape: f32[1,128], index: 2, kind: input, shape index: {}]   ;;  %s1213_s3 = inlined_call_operand.vmem [shape: bf16[3,128,128], index: 3, kind: output, shape index: {}]  }
   0x1   :  { %s1140_s14 = smov 0  }
   0x2 LB: > { %s39_s15 = sadd.s32 1, %s1110_s13  ;;  %p880_p0 = scmp.ge.s32.totalorder %s1114_s14, 1  ;;  %s1114_s14 = sphi %s1140_s14, %s13_s14   ;;  %s1110_s13 = sphi %s1138_s13, %s1215_s13   ;;  %s1106_s12 = sphi %s1136_s12, %s1214_s12  }
   0x3   : > { %p41_p1 = scmp.ge.s32.totalorder %s39_s15, 3  ;;  %p209_p2 = scmp.lt.s32.totalorder %s1114_s14, 4 }
   0x5   : > { %s1217_s15 = smov (%p41_p1, %s39_s15), 0  ;;  %p210_p3 = pnand %p880_p0, %p209_p2 }
   0x6   : > { %p263_p4 = scmp.lt.s32.totalorder (!%p210_p3), %s1106_s12, 2  ;;  %v903_v16 = vld [vmem:[%s1212_s2] ss:$0 sm:$0xff] (!%p210_p3) }
   0x7   : > { %213 = sbr.rel (%p210_p3) target bundleno = 280 (0x118), region = 32 }
   0xe   : > { %s1219_s12 = smov (!%p263_p4, %s1106_s12), 2 }
   0xf   : > { %s1154_s16 = sshll.u32 %s1219_s12, 6 }
  0x10   : > { %s1160_s19 = scalar_lea.vmem %s1211_s1, %s1154_s16  ;;  %s1169_s22 = scalar_lea.vmem %s1210_s0, %s1154_s16 }
  0x11   : > { %v1076_v0 = vld [vmem:[%s1160_s19] sm:$0xff]   ;;  %v1077_v1 = vld [vmem:[%s1160_s19 + $0x8] sm:$0xff]   ;;  %v1078_v2 = vld [vmem:[%s1160_s19 + $0x10] sm:$0xff]   ;;  %s1191_s27 = scalar_lea.vmem %s1213_s3, %s1154_s16 }
  0x12   : > { %1004 = vmatprep.subr.bf16.mxu0 %v1076_v0  ;;  %1036 = vmatprep.subr.bf16.mxu1 %v1076_v0  ;;  %v1079_v3 = vld [vmem:[%s1160_s19 + $0x18] sm:$0xff]   ;;  %v1084_v4 = vld [vmem:[%s1169_s22] sm:$0xff]   ;;  %v1081_v7 = vld [vmem:[%s1160_s19 + $0x28] sm:$0xff]  }
  0x13   : > { %1005 = vmatpush3.bf16.msra.mxu0 %v1076_v0  ;;  %1044 = vmatpush3.bf16.msra.mxu1 %v1076_v0  ;;  %v1085_v5 = vld [vmem:[%s1169_s22 + $0x20] sm:$0xff]   ;;  %v1082_v8 = vld [vmem:[%s1160_s19 + $0x30] sm:$0xff]   ;;  %v1083_v9 = vld [vmem:[%s1160_s19 + $0x38] sm:$0xff]  }
  0x14   : > { %1006 = vmatprep.subr.bf16.mxu0 %v1077_v1  ;;  %1037 = vmatprep.subr.bf16.mxu1 %v1077_v1  ;;  %v1080_v6 = vld [vmem:[%s1160_s19 + $0x20] sm:$0xff]   ;;  %v1086_v10 = vld [vmem:[%s1169_s22 + $0x8] sm:$0xff]   ;;  %v1088_v12 = vld [vmem:[%s1169_s22 + $0x10] sm:$0xff]  }
  0x15   : > { %1020 = vmatprep.mubr.bf16.mxu0 %v1084_v4  ;;  %1028 = vmatprep.mubr.bf16.mxu1 %v1085_v5  ;;  %v1087_v11 = vld [vmem:[%s1169_s22 + $0x28] sm:$0xff]   ;;  %v1089_v13 = vld [vmem:[%s1169_s22 + $0x30] sm:$0xff]   ;;  %v1090_v14 = vld [vmem:[%s1169_s22 + $0x18] sm:$0xff]  }
  0x16   : > { %v1091_v15 = vld [vmem:[%s1169_s22 + $0x38] sm:$0xff]  }
  0x17   : > { %1007 = vmatpush3.bf16.msra.mxu0 %v1077_v1  ;;  %1045 = vmatpush3.bf16.msra.mxu1 %v1077_v1 }
  0x18   : > { %1008 = vmatprep.subr.bf16.mxu0 %v1078_v2  ;;  %1038 = vmatprep.subr.bf16.mxu1 %v1078_v2 }
  0x1b   : > { %1009 = vmatpush3.bf16.msra.mxu0 %v1078_v2  ;;  %1046 = vmatpush3.bf16.msra.mxu1 %v1078_v2 }
  0x1c   : > { %1010 = vmatprep.subr.bf16.mxu0 %v1079_v3  ;;  %1039 = vmatprep.subr.bf16.mxu1 %v1079_v3 }
  0x1f   : > { %1011 = vmatpush3.bf16.msra.mxu0 %v1079_v3  ;;  %1047 = vmatpush3.bf16.msra.mxu1 %v1079_v3 }
  0x20   : > { %1012 = vmatprep.subr.bf16.mxu0 %v1080_v6  ;;  %1040 = vmatprep.subr.bf16.mxu1 %v1080_v6 }
  0x23   : > { %1013 = vmatpush3.bf16.msra.mxu0 %v1080_v6  ;;  %1048 = vmatpush3.bf16.msra.mxu1 %v1080_v6 }
  0x24   : > { %1014 = vmatprep.subr.bf16.mxu0 %v1081_v7  ;;  %1041 = vmatprep.subr.bf16.mxu1 %v1081_v7 }
  0x27   : > { %1015 = vmatpush3.bf16.msra.mxu0 %v1081_v7  ;;  %1049 = vmatpush3.bf16.msra.mxu1 %v1081_v7 }
  0x28   : > { %1016 = vmatprep.subr.bf16.mxu0 %v1082_v8  ;;  %1042 = vmatprep.subr.bf16.mxu1 %v1082_v8 }
  0x2b   : > { %1017 = vmatpush3.bf16.msra.mxu0 %v1082_v8  ;;  %1050 = vmatpush3.bf16.msra.mxu1 %v1082_v8 }
  0x2c   : > { %1018 = vmatprep.subr.bf16.mxu0 %v1083_v9  ;;  %1043 = vmatprep.subr.bf16.mxu1 %v1083_v9 }
  0x2f   : > { %1019 = vmatpush3.bf16.msra.mxu0 %v1083_v9  ;;  %1051 = vmatpush3.bf16.msra.mxu1 %v1083_v9 }
  0x32   : > { %1021 = vmatmul.mubr.bf16.vlgmr.msra.gmra.mrb[0].mxu0 %v1086_v10  ;;  %1029 = vmatmul.mubr.bf16.vlgmr.msra.gmra.mrb[0].mxu1 %v1087_v11 }
  0x33   : > { %1024 = vmatprep.mubr.bf16.mxu0 %v1088_v12  ;;  %1032 = vmatprep.mubr.bf16.mxu1 %v1089_v13 }
  0x3a   : > { %1025 = vmatmul.mubr.bf16.gmra.mrb[4].mxu0 %v1090_v14  ;;  %1033 = vmatmul.mubr.bf16.gmra.mrb[4].mxu1 %v1091_v15 }
 0x105   : > { %v1022_v17 = vpop.f32.mrb[0].mxu0  ;;  %v1030_v18 = vpop.f32.mrb[0].mxu1 }
 0x106   : > { %v626_v19 = vadd.f32 %v1022_v17, %v903_v16  ;;  %v634_v20 = vadd.f32 %v1030_v18, %v903_v16  ;;  %v503_v21 = vpop.f32.mrb[1].mxu0  ;;  %v535_v22 = vpop.f32.mrb[1].mxu1 }
 0x107   : > { %v624_v23 = vadd.f32 %v903_v16, %v503_v21  ;;  %v632_v24 = vadd.f32 %v903_v16, %v535_v22  ;;  %v1023_v25 = vpop.f32.mrb[2].mxu0  ;;  %v1031_v26 = vpop.f32.mrb[2].mxu1 }
 0x108   : > { %v627_v27 = vadd.f32 %v1023_v25, %v903_v16  ;;  %v635_v28 = vadd.f32 %v1031_v26, %v903_v16  ;;  %v506_v29 = vpop.f32.mrb[3].mxu0  ;;  %v538_v30 = vpop.f32.mrb[3].mxu1  ;;  %v642_v33 = vmax.f32 %v626_v19, 0.0  ;;  %v650_v34 = vmax.f32 %v634_v20, 0.0 }
 0x109   : > { %v625_v31 = vadd.f32 %v903_v16, %v506_v29  ;;  %v633_v32 = vadd.f32 %v903_v16, %v538_v30  ;;  %v640_v37 = vmax.f32 %v624_v23, 0.0  ;;  %v648_v38 = vmax.f32 %v632_v24, 0.0 }
 0x10a   : > { %v643_v35 = vmax.f32 %v627_v27, 0.0  ;;  %v651_v36 = vmax.f32 %v635_v28, 0.0 }
 0x10b   : > { %v641_v39 = vmax.f32 %v625_v31, 0.0  ;;  %v649_v40 = vmax.f32 %v633_v32, 0.0 }
 0x10c   : > { %v949_v41 = vpack.c.bf16 %v643_v35, %v642_v33  ;;  %v969_v42 = vpack.c.bf16 %v651_v36, %v650_v34 }
 0x10d   : > { %v944_v43 = vpack.c.bf16 %v641_v39, %v640_v37  ;;  %v964_v44 = vpack.c.bf16 %v649_v40, %v648_v38  ;;  %v1026_v45 = vpop.f32.mrb[4].mxu0  ;;  %v1034_v46 = vpop.f32.mrb[4].mxu1 }
 0x10e   : > { %981 = vst [vmem:[%s1191_s27 + $0x8] sm:$0xff] %v949_v41   ;;  %985 = vst [vmem:[%s1191_s27 + $0x28] sm:$0xff] %v969_v42   ;;  %v630_v47 = vadd.f32 %v1026_v45, %v903_v16  ;;  %v638_v48 = vadd.f32 %v1034_v46, %v903_v16  ;;  %v519_v49 = vpop.f32.mrb[5].mxu0  ;;  %v551_v50 = vpop.f32.mrb[5].mxu1 }
 0x10f   : > { %945 = vst [vmem:[%s1191_s27] sm:$0xff] %v944_v43   ;;  %984 = vst [vmem:[%s1191_s27 + $0x20] sm:$0xff] %v964_v44   ;;  %v628_v51 = vadd.f32 %v903_v16, %v519_v49  ;;  %v636_v52 = vadd.f32 %v903_v16, %v551_v50  ;;  %v1027_v53 = vpop.f32.mrb[6].mxu0  ;;  %v1035_v54 = vpop.f32.mrb[6].mxu1 }
 0x110   : > { %v631_v55 = vadd.f32 %v1027_v53, %v903_v16  ;;  %v639_v56 = vadd.f32 %v1035_v54, %v903_v16  ;;  %v522_v57 = vpop.f32.mrb[7].mxu0  ;;  %v554_v58 = vpop.f32.mrb[7].mxu1  ;;  %v646_v61 = vmax.f32 %v630_v47, 0.0  ;;  %v654_v62 = vmax.f32 %v638_v48, 0.0 }
 0x111   : > { %v629_v59 = vadd.f32 %v903_v16, %v522_v57  ;;  %v637_v60 = vadd.f32 %v903_v16, %v554_v58  ;;  %v644_v1 = vmax.f32 %v628_v51, 0.0  ;;  %v652_v2 = vmax.f32 %v636_v52, 0.0 }
 0x112   : > { %v647_v63 = vmax.f32 %v631_v55, 0.0  ;;  %v655_v0 = vmax.f32 %v639_v56, 0.0 }
 0x113   : > { %v645_v3 = vmax.f32 %v629_v59, 0.0  ;;  %v653_v4 = vmax.f32 %v637_v60, 0.0 }
 0x114   : > { %v959_v5 = vpack.c.bf16 %v647_v63, %v646_v61  ;;  %v979_v6 = vpack.c.bf16 %v655_v0, %v654_v62 }
 0x115   : > { %v954_v7 = vpack.c.bf16 %v645_v3, %v644_v1  ;;  %v974_v8 = vpack.c.bf16 %v653_v4, %v652_v2 }
 0x116   : > { %983 = vst [vmem:[%s1191_s27 + $0x18] sm:$0xff] %v959_v5   ;;  %987 = vst [vmem:[%s1191_s27 + $0x38] sm:$0xff] %v979_v6  }
 0x117   : > { %982 = vst [vmem:[%s1191_s27 + $0x10] sm:$0xff] %v954_v7   ;;  %986 = vst [vmem:[%s1191_s27 + $0x30] sm:$0xff] %v974_v8  }
 0x118 PF: > { %s13_s14 = sadd.s32 1, %s1114_s14   ;;  %s1214_s12 = smov %s1110_s13 }
 0x119   : > { %p10_p5 = scmp.ge.s32.totalorder %s13_s14, 5   ;;  %s1215_s13 = smov %s1217_s15 }
 0x11b   :  { %12 = sbr.rel (!%p10_p5) target bundleno = 2 (0x2), region = 76 }

// kernel: encoder_forward.7
= control target key start
LH: loop header
LB: loop body
LE: loop exit
PB: predicated region body
PF: predicated region fallthrough
CT: control target
= control target key end

     0   :  { %s977_s12 = smov 0   ;;  %s979_s13 = smov 0   ;;  %s1058_s0 = inlined_call_operand.vmem [shape: bf16[3,128,128], index: 0, kind: input, shape index: {}]   ;;  %s1059_s1 = inlined_call_operand.vmem [shape: bf16[3,128,128], index: 1, kind: input, shape index: {}]   ;;  %s1060_s2 = inlined_call_operand.vmem [shape: f32[1,128], index: 2, kind: input, shape index: {}]   ;;  %s1061_s3 = inlined_call_operand.vmem [shape: f32[3,128,128], index: 3, kind: output, shape index: {}]  }
   0x1   :  { %s981_s14 = smov 0  }
   0x2 LB: > { %s39_s15 = sadd.s32 1, %s951_s13  ;;  %p800_p0 = scmp.ge.s32.totalorder %s955_s14, 1  ;;  %s955_s14 = sphi %s981_s14, %s13_s14   ;;  %s951_s13 = sphi %s979_s13, %s1063_s13   ;;  %s947_s12 = sphi %s977_s12, %s1062_s12  }
   0x3   : > { %p41_p1 = scmp.ge.s32.totalorder %s39_s15, 3  ;;  %p209_p2 = scmp.lt.s32.totalorder %s955_s14, 4 }
   0x5   : > { %s1065_s15 = smov (%p41_p1, %s39_s15), 0  ;;  %p210_p3 = pnand %p800_p0, %p209_p2 }
   0x6   : > { %p263_p4 = scmp.lt.s32.totalorder (!%p210_p3), %s947_s12, 2  ;;  %v823_v16 = vld [vmem:[%s1060_s2] ss:$0 sm:$0xff] (!%p210_p3) }
   0x7   : > { %213 = sbr.rel (%p210_p3) target bundleno = 276 (0x114), region = 32 }
   0xe   : > { %s1067_s12 = smov (!%p263_p4, %s947_s12), 2 }
   0xf   : > { %s826_s16 = sshll.u32 %s1067_s12, 6  ;;  %s828_s23 = sshll.u32 %s1067_s12, 7 }
  0x10   : > { %s1001_s19 = scalar_lea.vmem %s1059_s1, %s826_s16  ;;  %s1009_s22 = scalar_lea.vmem %s1058_s0, %s826_s16 }
  0x11   : > { %v917_v0 = vld [vmem:[%s1001_s19] sm:$0xff]   ;;  %v918_v1 = vld [vmem:[%s1001_s19 + $0x8] sm:$0xff]   ;;  %v919_v2 = vld [vmem:[%s1001_s19 + $0x10] sm:$0xff]   ;;  %s1031_s28 = scalar_lea.vmem %s1061_s3, %s828_s23 }
  0x12   : > { %845 = vmatprep.subr.bf16.mxu0 %v917_v0  ;;  %877 = vmatprep.subr.bf16.mxu1 %v917_v0  ;;  %v920_v3 = vld [vmem:[%s1001_s19 + $0x18] sm:$0xff]   ;;  %v925_v4 = vld [vmem:[%s1009_s22] sm:$0xff]   ;;  %v922_v7 = vld [vmem:[%s1001_s19 + $0x28] sm:$0xff]  }
  0x13   : > { %846 = vmatpush3.bf16.msra.mxu0 %v917_v0  ;;  %885 = vmatpush3.bf16.msra.mxu1 %v917_v0  ;;  %v926_v5 = vld [vmem:[%s1009_s22 + $0x20] sm:$0xff]   ;;  %v923_v8 = vld [vmem:[%s1001_s19 + $0x30] sm:$0xff]   ;;  %v924_v9 = vld [vmem:[%s1001_s19 + $0x38] sm:$0xff]  }
  0x14   : > { %847 = vmatprep.subr.bf16.mxu0 %v918_v1  ;;  %878 = vmatprep.subr.bf16.mxu1 %v918_v1  ;;  %v921_v6 = vld [vmem:[%s1001_s19 + $0x20] sm:$0xff]   ;;  %v927_v10 = vld [vmem:[%s1009_s22 + $0x8] sm:$0xff]   ;;  %v929_v12 = vld [vmem:[%s1009_s22 + $0x10] sm:$0xff]  }
  0x15   : > { %861 = vmatprep.mubr.bf16.mxu0 %v925_v4  ;;  %869 = vmatprep.mubr.bf16.mxu1 %v926_v5  ;;  %v928_v11 = vld [vmem:[%s1009_s22 + $0x28] sm:$0xff]   ;;  %v930_v13 = vld [vmem:[%s1009_s22 + $0x30] sm:$0xff]   ;;  %v931_v14 = vld [vmem:[%s1009_s22 + $0x18] sm:$0xff]  }
  0x16   : > { %v932_v15 = vld [vmem:[%s1009_s22 + $0x38] sm:$0xff]  }
  0x17   : > { %848 = vmatpush3.bf16.msra.mxu0 %v918_v1  ;;  %886 = vmatpush3.bf16.msra.mxu1 %v918_v1 }
  0x18   : > { %849 = vmatprep.subr.bf16.mxu0 %v919_v2  ;;  %879 = vmatprep.subr.bf16.mxu1 %v919_v2 }
  0x1b   : > { %850 = vmatpush3.bf16.msra.mxu0 %v919_v2  ;;  %887 = vmatpush3.bf16.msra.mxu1 %v919_v2 }
  0x1c   : > { %851 = vmatprep.subr.bf16.mxu0 %v920_v3  ;;  %880 = vmatprep.subr.bf16.mxu1 %v920_v3 }
  0x1f   : > { %852 = vmatpush3.bf16.msra.mxu0 %v920_v3  ;;  %888 = vmatpush3.bf16.msra.mxu1 %v920_v3 }
  0x20   : > { %853 = vmatprep.subr.bf16.mxu0 %v921_v6  ;;  %881 = vmatprep.subr.bf16.mxu1 %v921_v6 }
  0x23   : > { %854 = vmatpush3.bf16.msra.mxu0 %v921_v6  ;;  %889 = vmatpush3.bf16.msra.mxu1 %v921_v6 }
  0x24   : > { %855 = vmatprep.subr.bf16.mxu0 %v922_v7  ;;  %882 = vmatprep.subr.bf16.mxu1 %v922_v7 }
  0x27   : > { %856 = vmatpush3.bf16.msra.mxu0 %v922_v7  ;;  %890 = vmatpush3.bf16.msra.mxu1 %v922_v7 }
  0x28   : > { %857 = vmatprep.subr.bf16.mxu0 %v923_v8  ;;  %883 = vmatprep.subr.bf16.mxu1 %v923_v8 }
  0x2b   : > { %858 = vmatpush3.bf16.msra.mxu0 %v923_v8  ;;  %891 = vmatpush3.bf16.msra.mxu1 %v923_v8 }
  0x2c   : > { %859 = vmatprep.subr.bf16.mxu0 %v924_v9  ;;  %884 = vmatprep.subr.bf16.mxu1 %v924_v9 }
  0x2f   : > { %860 = vmatpush3.bf16.msra.mxu0 %v924_v9  ;;  %892 = vmatpush3.bf16.msra.mxu1 %v924_v9 }
  0x32   : > { %862 = vmatmul.mubr.bf16.vlgmr.msra.gmra.mrb[0].mxu0 %v927_v10  ;;  %870 = vmatmul.mubr.bf16.vlgmr.msra.gmra.mrb[0].mxu1 %v928_v11 }
  0x33   : > { %865 = vmatprep.mubr.bf16.mxu0 %v929_v12  ;;  %873 = vmatprep.mubr.bf16.mxu1 %v930_v13 }
  0x3a   : > { %866 = vmatmul.mubr.bf16.gmra.mrb[4].mxu0 %v931_v14  ;;  %874 = vmatmul.mubr.bf16.gmra.mrb[4].mxu1 %v932_v15 }
 0x105   : > { %v863_v17 = vpop.f32.mrb[0].mxu0  ;;  %v871_v18 = vpop.f32.mrb[0].mxu1 }
 0x106   : > { %v626_v19 = vadd.f32 %v863_v17, %v823_v16  ;;  %v634_v20 = vadd.f32 %v871_v18, %v823_v16  ;;  %v503_v21 = vpop.f32.mrb[1].mxu0  ;;  %v535_v22 = vpop.f32.mrb[1].mxu1 }
 0x107   : > { %v624_v23 = vadd.f32 %v823_v16, %v503_v21  ;;  %v632_v24 = vadd.f32 %v823_v16, %v535_v22  ;;  %v864_v25 = vpop.f32.mrb[2].mxu0  ;;  %v872_v26 = vpop.f32.mrb[2].mxu1 }
 0x108   : > { %642 = vst [vmem:[%s1031_s28 + $0x10] sm:$0xff] %v626_v19  ;;  %650 = vst [vmem:[%s1031_s28 + $0x50] sm:$0xff] %v634_v20  ;;  %v627_v27 = vadd.f32 %v864_v25, %v823_v16  ;;  %v635_v28 = vadd.f32 %v872_v26, %v823_v16  ;;  %v506_v29 = vpop.f32.mrb[3].mxu0  ;;  %v538_v30 = vpop.f32.mrb[3].mxu1 }
 0x109   : > { %640 = vst [vmem:[%s1031_s28] sm:$0xff] %v624_v23  ;;  %648 = vst [vmem:[%s1031_s28 + $0x40] sm:$0xff] %v632_v24  ;;  %v625_v31 = vadd.f32 %v823_v16, %v506_v29  ;;  %v633_v32 = vadd.f32 %v823_v16, %v538_v30 }
 0x10a   : > { %643 = vst [vmem:[%s1031_s28 + $0x18] sm:$0xff] %v627_v27  ;;  %651 = vst [vmem:[%s1031_s28 + $0x58] sm:$0xff] %v635_v28 }
 0x10b   : > { %641 = vst [vmem:[%s1031_s28 + $0x8] sm:$0xff] %v625_v31  ;;  %649 = vst [vmem:[%s1031_s28 + $0x48] sm:$0xff] %v633_v32 }
 0x10d   : > { %v867_v33 = vpop.f32.mrb[4].mxu0  ;;  %v875_v34 = vpop.f32.mrb[4].mxu1 }
 0x10e   : > { %v630_v35 = vadd.f32 %v867_v33, %v823_v16  ;;  %v638_v36 = vadd.f32 %v875_v34, %v823_v16  ;;  %v519_v37 = vpop.f32.mrb[5].mxu0  ;;  %v551_v38 = vpop.f32.mrb[5].mxu1 }
 0x10f   : > { %v628_v39 = vadd.f32 %v823_v16, %v519_v37  ;;  %v636_v40 = vadd.f32 %v823_v16, %v551_v38  ;;  %v868_v41 = vpop.f32.mrb[6].mxu0  ;;  %v876_v42 = vpop.f32.mrb[6].mxu1 }
 0x110   : > { %646 = vst [vmem:[%s1031_s28 + $0x30] sm:$0xff] %v630_v35  ;;  %654 = vst [vmem:[%s1031_s28 + $0x70] sm:$0xff] %v638_v36  ;;  %v631_v43 = vadd.f32 %v868_v41, %v823_v16  ;;  %v639_v44 = vadd.f32 %v876_v42, %v823_v16  ;;  %v522_v45 = vpop.f32.mrb[7].mxu0  ;;  %v554_v46 = vpop.f32.mrb[7].mxu1 }
 0x111   : > { %644 = vst [vmem:[%s1031_s28 + $0x20] sm:$0xff] %v628_v39  ;;  %652 = vst [vmem:[%s1031_s28 + $0x60] sm:$0xff] %v636_v40  ;;  %v629_v47 = vadd.f32 %v823_v16, %v522_v45  ;;  %v637_v48 = vadd.f32 %v823_v16, %v554_v46 }
 0x112   : > { %647 = vst [vmem:[%s1031_s28 + $0x38] sm:$0xff] %v631_v43  ;;  %655 = vst [vmem:[%s1031_s28 + $0x78] sm:$0xff] %v639_v44 }
 0x113   : > { %645 = vst [vmem:[%s1031_s28 + $0x28] sm:$0xff] %v629_v47  ;;  %653 = vst [vmem:[%s1031_s28 + $0x68] sm:$0xff] %v637_v48 }
 0x114 PF: > { %s13_s14 = sadd.s32 1, %s955_s14   ;;  %s1062_s12 = smov %s951_s13 }
 0x115   : > { %p10_p5 = scmp.ge.s32.totalorder %s13_s14, 5   ;;  %s1063_s13 = smov %s1065_s15 }
 0x117   :  { %12 = sbr.rel (!%p10_p5) target bundleno = 2 (0x2), region = 76 }

</bundles_post_ra>
